<compile_context>
chip_gen: v5e
topology: v5e:2x2
jax: 0.10.0
libtpu: 0.0.40
codegen_flags: <defaults>
</compile_context>

<pallas_src>
import jax
import jax.numpy as jnp
from jax.experimental import pallas as pl
from jax.experimental.pallas import tpu as pltpu


def _edge_enhancer_kernel(e_ref, w_ref, b_ref, x_ref, o_ref):
    # e_ref: (S, S)        VMEM  — fused (identity - avgpool3x3) operator on flattened HW
    # w_ref: (BnC, BnC)    VMEM  — block-diagonal 1x1-conv weight with BN scale folded in
    # b_ref: (BnC, 1)      VMEM  — folded BN bias (tiled per batch element in the block)
    # x_ref: (Bn, C, S)    VMEM  — input block (lane-dense, S = H*W)
    # o_ref: (Bn, C, S)    VMEM  — output block
    bn, c, s = x_ref.shape
    x2 = x_ref[...].reshape(bn * c, s)                                        # (BnC, S)

    # edge = x - avgpool3x3(x), as one lane-dense MXU matmul.
    edge = jnp.dot(x2, e_ref[...], preferred_element_type=jnp.float32)        # (BnC, S)

    # 1x1 conv + folded eval-mode BatchNorm (single MXU matmul), then sigmoid (EUP).
    z = jnp.dot(w_ref[...], edge, preferred_element_type=jnp.float32) + b_ref[...]

    out = x2.astype(jnp.float32) + jax.nn.sigmoid(z)
    o_ref[...] = out.reshape(bn, c, s).astype(o_ref.dtype)


def _pick_block_batch(n, bytes_per_sample, c, target_bytes=2 << 20):
    """Batch elements per grid step: ~MiB-scale tiles, >=2 grid steps when possible."""
    bn = max(1, min(n, target_bytes // max(1, bytes_per_sample)))
    if n >= 2:
        bn = min(bn, n // 2)          # keep >= 2 grid steps (v7x 2 TCs / megacore)
    bn = max(1, min(bn, max(1, 256 // c)))   # cap Bn*C so the block-diag weight stays small
    while n % bn:
        bn -= 1
    return max(bn, 1)


def edge_enhancer(x, conv_w, gamma, beta, running_mean, running_var, eps=1e-5):
    """x: (N, C, H, W) f32. conv_w: (C, C, 1, 1). BN params: (C,)."""
    N, C, H, W = x.shape
    S = H * W

    # --- Fold eval-mode BatchNorm into the 1x1 conv (mathematically exact). ---
    scale = gamma / jnp.sqrt(running_var + eps)                               # (C,)
    w_fold = (conv_w[:, :, 0, 0] * scale[:, None]).astype(jnp.float32)        # (C, C)
    b_fold = (beta - running_mean * scale).astype(jnp.float32)                # (C,)

    # --- Fused "x - avgpool3x3(x)" operator on the flattened spatial axis. ---
    idx_h = jnp.arange(H)
    a_h = (jnp.abs(idx_h[:, None] - idx_h[None, :]) <= 1).astype(jnp.float32)  # (H, H)
    idx_w = jnp.arange(W)
    a_w = (jnp.abs(idx_w[:, None] - idx_w[None, :]) <= 1).astype(jnp.float32)  # (W, W)
    edge_op = (jnp.eye(S, dtype=jnp.float32)
               - jnp.kron(a_h, a_w) * (1.0 / 9.0)).astype(jnp.float32)         # (S, S)

    # --- Block size / grid. ---
    bytes_per_sample = C * S * 4
    Bn = _pick_block_batch(N, bytes_per_sample, C)
    BnC = Bn * C

    # Block-diagonal conv weight so one matmul covers all Bn batch elements per step.
    w_bd = jnp.kron(jnp.eye(Bn, dtype=jnp.float32), w_fold)                   # (BnC, BnC)
    b_bd = jnp.tile(b_fold, Bn).reshape(BnC, 1)                               # (BnC, 1)

    # Explicit VMEM budget (double-buffered in/out blocks + operators + slack),
    # capped well under v7x's 64 MiB physical VMEM.
    block_bytes = Bn * C * S * 4
    op_bytes = S * S * 4 + BnC * BnC * 4 + BnC * 4
    vmem_limit = 4 * block_bytes + 2 * op_bytes + (4 << 20)
    vmem_limit = int(min(max(vmem_limit, 16 << 20), 48 << 20))

    # Lane-dense view: NCHW -> (N, C, H*W) is a free, contiguous reshape in the wrapper.
    x3 = x.reshape(N, C, S)

    out3 = pl.pallas_call(
        _edge_enhancer_kernel,
        out_shape=jax.ShapeDtypeStruct((N, C, S), x.dtype),
        grid_spec=pltpu.PrefetchScalarGridSpec(
            num_scalar_prefetch=0,
            grid=(N // Bn,),
            in_specs=[
                pl.BlockSpec((S, S), lambda n: (0, 0)),             # edge_op (constant)
                pl.BlockSpec((BnC, BnC), lambda n: (0, 0)),         # folded conv weight
                pl.BlockSpec((BnC, 1), lambda n: (0, 0)),           # folded bias
                pl.BlockSpec((Bn, C, S), lambda n: (n, 0, 0)),      # input block
            ],
            out_specs=pl.BlockSpec((Bn, C, S), lambda n: (n, 0, 0)),
        ),
        compiler_params=pltpu.CompilerParams(
            dimension_semantics=("parallel",),
            vmem_limit_bytes=vmem_limit,
        ),
    )(edge_op, w_bd, b_bd, x3)

    return out3.reshape(N, C, H, W)


def edge_enhancer_ref(x, conv_w, gamma, beta, running_mean, running_var, eps=1e-5):
    """Pure-JAX reference (mirrors the PyTorch forward in eval mode)."""
    pooled = jax.lax.reduce_window(
        x, 0.0, jax.lax.add,
        window_dimensions=(1, 1, 3, 3), window_strides=(1, 1, 1, 1),
        padding=((0, 0), (0, 0), (1, 1), (1, 1))) / 9.0
    edge = x - pooled
    z = jnp.einsum("oc,nchw->nohw", conv_w[:, :, 0, 0], edge)
    z = (z - running_mean[None, :, None, None]) / jnp.sqrt(running_var + eps)[None, :, None, None]
    z = z * gamma[None, :, None, None] + beta[None, :, None, None]
    return x + jax.nn.sigmoid(z)


if __name__ == "__main__":
    N, C, H, W = 2, 4, 16, 16

    key = jax.random.PRNGKey(0)
    kx, kw, kg, kb, km, kv = jax.random.split(key, 6)

    x = jax.random.normal(kx, (N, C, H, W), dtype=jnp.float32)
    conv_w = 0.5 * jax.random.normal(kw, (C, C, 1, 1), dtype=jnp.float32)   # Conv2d(C, C, 1, bias=False)
    gamma = jax.random.uniform(kg, (C,), minval=0.5, maxval=1.5, dtype=jnp.float32)
    beta = 0.1 * jax.random.normal(kb, (C,), dtype=jnp.float32)
    running_mean = 0.1 * jax.random.normal(km, (C,), dtype=jnp.float32)
    running_var = jax.random.uniform(kv, (C,), minval=0.5, maxval=1.5, dtype=jnp.float32)

    out = edge_enhancer(x, conv_w, gamma, beta, running_mean, running_var)
    out = jax.block_until_ready(out)

    ref = edge_enhancer_ref(x, conv_w, gamma, beta, running_mean, running_var)
    assert out.shape == (N, C, H, W) and out.dtype == jnp.float32
    assert jnp.allclose(out, ref, atol=1e-5, rtol=1e-5), float(jnp.max(jnp.abs(out - ref)))

    print("KERNEL_OK")
</pallas_src>

<mosaic_0001>
module attributes {stable_mosaic.version = 11 : i64} {
  func.func @_edge_enhancer_kernel(%arg0: i32, %arg1: memref<256x256xf32, #tpu.memory_space<vmem>>, %arg2: memref<4x4xf32, #tpu.memory_space<vmem>>, %arg3: memref<4x1xf32, #tpu.memory_space<vmem>>, %arg4: memref<1x4x256xf32, #tpu.memory_space<vmem>>, %arg5: memref<1x4x256xf32, #tpu.memory_space<vmem>>) attributes {dimension_semantics = [#tpu.dimension_semantics<parallel>], iteration_bounds = array<i64: 2>, scalar_prefetch = 0 : i64, scratch_operands = 0 : i64, tpu.core_type = #tpu.core_type<tc>, window_params = [{pipeline_mode = #tpu.pipeline_mode<synchronous>, transform_indices = @transform_0, window_bounds = array<i64: 256, 256>}, {pipeline_mode = #tpu.pipeline_mode<synchronous>, transform_indices = @transform_1, window_bounds = array<i64: 4, 4>}, {pipeline_mode = #tpu.pipeline_mode<synchronous>, transform_indices = @transform_2, window_bounds = array<i64: 4, 1>}, {transform_indices = @transform_3, window_bounds = array<i64: 1, 4, 256>}, {transform_indices = @transform_4, window_bounds = array<i64: 1, 4, 256>}]} {
    %c0 = arith.constant 0 : index
    %c0_0 = arith.constant 0 : index
    %c0_1 = arith.constant 0 : index
    %0 = vector.load %arg4[%c0, %c0_0, %c0_1] : memref<1x4x256xf32, #tpu.memory_space<vmem>>, vector<1x4x256xf32>
    %1 = vector.shape_cast %0 : vector<1x4x256xf32> to vector<4x256xf32>
    %c0_2 = arith.constant 0 : index
    %c0_3 = arith.constant 0 : index
    %2 = vector.load %arg1[%c0_2, %c0_3] : memref<256x256xf32, #tpu.memory_space<vmem>>, vector<256x256xf32>
    %cst = arith.constant dense<0.000000e+00> : vector<4x256xf32>
    %3 = tpu.matmul %1, %2, %cst {dimension_numbers = #tpu.dot_dimension_numbers<[1], [0], [0], [1], [0, 0, 1, 1], [], []>} : vector<4x256xf32>, vector<256x256xf32>, vector<4x256xf32> -> vector<4x256xf32>
    %c0_4 = arith.constant 0 : index
    %c0_5 = arith.constant 0 : index
    %4 = vector.load %arg2[%c0_4, %c0_5] : memref<4x4xf32, #tpu.memory_space<vmem>>, vector<4x4xf32>
    %cst_6 = arith.constant dense<0.000000e+00> : vector<4x256xf32>
    %5 = tpu.matmul %4, %3, %cst_6 {dimension_numbers = #tpu.dot_dimension_numbers<[1], [0], [0], [1], [0, 0, 1, 1], [], []>} : vector<4x4xf32>, vector<4x256xf32>, vector<4x256xf32> -> vector<4x256xf32>
    %c0_7 = arith.constant 0 : index
    %c0_8 = arith.constant 0 : index
    %6 = vector.load %arg3[%c0_7, %c0_8] : memref<4x1xf32, #tpu.memory_space<vmem>>, vector<4x1xf32>
    %7 = vector.broadcast %6 : vector<4x1xf32> to vector<4x256xf32>
    %8 = arith.addf %5, %7 : vector<4x256xf32>
    %9 = arith.negf %8 : vector<4x256xf32>
    %10 = math.exp %9 : vector<4x256xf32>
    %cst_9 = arith.constant 1.000000e+00 : f32
    %11 = vector.broadcast %cst_9 : f32 to vector<4x256xf32>
    %12 = arith.addf %11, %10 : vector<4x256xf32>
    %13 = arith.divf %11, %12 : vector<4x256xf32>
    %14 = arith.addf %1, %13 : vector<4x256xf32>
    %15 = vector.shape_cast %14 : vector<4x256xf32> to vector<1x4x256xf32>
    %c0_10 = arith.constant 0 : index
    %c0_11 = arith.constant 0 : index
    %c0_12 = arith.constant 0 : index
    %16 = vector.load %arg5[%c0_10, %c0_11, %c0_12] : memref<1x4x256xf32, #tpu.memory_space<vmem>>, vector<1x4x256xf32>
    tpu.vector_store %arg5[%c0_10, %c0_11, %c0_12], %15 {strides = array<i32>} : memref<1x4x256xf32, #tpu.memory_space<vmem>>, vector<1x4x256xf32>,
    return
  }
  func.func @transform_0(%arg0: i32) -> (i32, i32) {
    %c0_i32 = arith.constant 0 : i32
    %c0_i32_0 = arith.constant 0 : i32
    %c0_i32_1 = arith.constant 0 : i32
    return %c0_i32, %c0_i32_0 : i32, i32
  }
  func.func @transform_1(%arg0: i32) -> (i32, i32) {
    %c0_i32 = arith.constant 0 : i32
    %c0_i32_0 = arith.constant 0 : i32
    %c0_i32_1 = arith.constant 0 : i32
    return %c0_i32, %c0_i32_0 : i32, i32
  }
  func.func @transform_2(%arg0: i32) -> (i32, i32) {
    %c0_i32 = arith.constant 0 : i32
    %c0_i32_0 = arith.constant 0 : i32
    %c0_i32_1 = arith.constant 0 : i32
    return %c0_i32, %c0_i32_0 : i32, i32
  }
  func.func @transform_3(%arg0: i32) -> (i32, i32, i32) {
    %c0_i32 = arith.constant 0 : i32
    %c0_i32_0 = arith.constant 0 : i32
    %c0_i32_1 = arith.constant 0 : i32
    return %arg0, %c0_i32, %c0_i32_0 : i32, i32, i32
  }
  func.func @transform_4(%arg0: i32) -> (i32, i32, i32) {
    %c0_i32 = arith.constant 0 : i32
    %c0_i32_0 = arith.constant 0 : i32
    %c0_i32_1 = arith.constant 0 : i32
    return %arg0, %c0_i32, %c0_i32_0 : i32, i32, i32
  }
}

</mosaic_0001>

<bundles_post_ra>
// kernel: tpu_custom_call.1
= control target key start
LH: loop header
LB: loop body
LE: loop exit
PB: predicated region body
PF: predicated region fallthrough
CT: control target
= control target key end

     0   :  { %9 = vsyncpa [#allocation3], 0  ;;  %s1002_s0 = inlined_call_operand.hbm [shape: f32[256,256], index: 0, kind: input, shape index: {}]   ;;  %s1003_s1 = inlined_call_operand.vmem [shape: f32[4,4], index: 1, kind: input, shape index: {}]   ;;  %s1004_s2 = inlined_call_operand.vmem [shape: f32[4,1], index: 2, kind: input, shape index: {}]   ;;  %s1005_s3 = inlined_call_operand.hbm [shape: f32[2,4,256], index: 3, kind: input, shape index: {}]   ;;  %s1006_s4 = inlined_call_operand.hbm [shape: f32[2,4,256], index: 4, kind: output, shape index: {}]  }
   0x1   :  { %10 = vsyncpa [#allocation6], 0 }
   0x2   :  { %12 = vsyncpa [#allocation6 + $0x1], 0 }
   0x3   :  { %13 = vsyncpa [#allocation4], 0 }
   0x4   :  { %15 = vsyncpa [#allocation4 + $0x1], 0  ;;  %s840_s15 = smov 0   ;;  %s842_s16 = smov 0  }
   0x5   :  { %s844_s17 = smov 0   ;;  %s846_s18 = smov 0  }
   0x6 LB: > { %s152_s21 = sshll.u32 %s1002_s0, 4  ;;  %s864_s22 = sadd.s32 4294967295, %s809_s18   ;;  %s809_s18 = sphi %s846_s18, %s1018_s18   ;;  %s805_s17 = sphi %s844_s17, %s1017_s17   ;;  %s801_s16 = sphi %s842_s16, %s1016_s16   ;;  %s797_s15 = sphi %s840_s15, %s1015_s15   ;;  %s153_s21 = int_to_ptr.hbm [resolvable:$true] %s152_s21 }
   0x7   : > { %p587_p0 = scmp.ge.s32.totalorder %s809_s18, 1  ;;  %p105_p1 = scmp.eq.s32.totalorder %s864_s22, 0 }
   0x8   : > { %p141_p2 = scmp.lt.s32.totalorder %s809_s18, 3  ;;  %s811_s24 = smov [#allocation2]  }
   0x9   : > { %s154_s25 = sshll.u32 %s811_s24, 4  ;;  %s812_s26 = smov 256   ;;  %s155_s25 = int_to_ptr.vmem [resolvable:$true] %s154_s25 }
   0xa   : > { %p869_p3 = pnand %p587_p0, %p141_p2  ;;  %s813_s27 = smov 16  }
   0xb   : > { %s586_s28 = sadd.s32 4294967294, %s809_s18   ;;  %s880_s29 = sadd.s32 1, %s809_s18  }
   0xc   : > { %p618_p4 = pneg %p869_p3  ;;  %s91_s30 = sadd.s32 1, %s805_s17 }
   0xd   : > { %s88_s5 = ssub.s32 %s809_s18, %s880_s29  ;;  %p98_p7 = scmp.ne.s32.totalorder %s805_s17, %s801_s16 }
   0xe   : > { %p619_p6 = pnand %p618_p4, %p105_p1  ;;  %p89_p8 = scmp.eq.s32.totalorder %s88_s5, 0 }
   0xf   : > { %p99_p9 = scmp.eq.s32.totalorder %s809_s18, 0  ;;  %p104_p10 = scmp.ne.s32.totalorder %s801_s16, %s797_s15 }
  0x10   : > { %621 = dma.hbm_to_vmem [thread:$0]  (!%p619_p6), %s153_s21, 8192, %s155_s25, [#allocation3], %s812_s26, %s812_s26, %s813_s27  }
  0x11   : > { %p128_p11 = scmp.eq.s32.totalorder %s864_s22, 1  ;;  %p896_p12 = por %p105_p1, %p104_p10 }
  0x12   : > { %s892_s6 = scalar_select %p89_p8, %s805_s17, %s91_s30  }
  0x13   : > { %p900_p13 = por %p128_p11, %p98_p7  ;;  %p134_p0 = scmp.eq.s32.totalorder %s586_s28, 1 }
  0x14   : > { %p100_p2 = por %p99_p9, %p98_p7  ;;  %s174_s9 = sand.u32 1, %s805_s17  }
  0x15   : > { %p905_p4 = por %p134_p0, %p104_p10  ;;  %p631_p6 = scmp.lt.s32.totalorder %s809_s18, 2 }
  0x16   : > { %s590_s11 = sshll.u32 %s174_s9, 3  ;;  %s608_s12 = sshll.u32 %s809_s18, 3 }
  0x17   : > { %s183_s19 = scalar_lea.hbm %s1005_s3, %s608_s12  ;;  %s178_s21 = scalar_lea.vmem [#allocation5], %s590_s11 }
  0x18   : > { %s185_s20 = sshll.u32 %s183_s19, 4  ;;  %s187_s24 = sshll.u32 %s178_s21, 4  ;;  %s186_s20 = int_to_ptr.hbm [resolvable:$true] %s185_s20  ;;  %s188_s24 = int_to_ptr.vmem [resolvable:$true] %s187_s24 }
  0x19   : > { %p914_p8 = pnand %p631_p6, %p100_p2  ;;  %s175_s26 = scalar_lea.sflag [#allocation6], %s174_s9 }
  0x1a   : > { %s709_s27 = sshra.s32 %s186_s20, 4  ;;  %s716_s11 = scalar_lea.hbm %s1005_s3, 16  ;;  %s710_s27 = int_to_ptr.hbm [resolvable:$true] %s709_s27 }
  0x1b   : > { %s711_s28 = scalar_lea.hbm %s710_s27, 8  ;;  %p713_p9 = pneg %p914_p8 }
  0x1c   : > { %p712_p7 = scmp.ne.s32.totalorder %s710_s27, %s711_s28  ;;  %p717_p0 = scmp.lt.s32.totalorder %s710_s27, %s1005_s3 }
  0x1d   : > { %p718_p2 = scmp.lt.s32.totalorder %s716_s11, %s711_s28 }
  0x1e   : > { %p714_p10 = pnand %p713_p9, %p712_p7 }
  0x1f   : > { %p719_p6 = por %p718_p2, %p717_p0 }
  0x20   : > { %p715_p11 = pneg %p714_p10 }
  0x22   : > { %p720_p5 = pnand %p719_p6, %p715_p11 }
  0x24   : > { %723 = shalt.err (!%p720_p5)
}
  0x25   : > { %625 = dma.hbm_to_vmem [thread:$0]  (!%p914_p8), %s186_s20, 128, %s188_s24, %s175_s26  }
  0x26   : > { %196 = sbr.rel (%p869_p3) target bundleno = 381 (0x17d), region = 36 }
  0x2b   : > { %784 = dma.done.wait (%p105_p1), [#allocation3], 8192  }
  0x2c   : > { %786 = vsyncadd (%p105_p1), [#allocation3], 4294959104  ;;  %s935_s9 = sand.u32 1, %s801_s16  }
  0x2d   : > { %s595_s14 = sshll.u32 %s935_s9, 3  ;;  %s204_s19 = scalar_lea.sflag [#allocation6], %s935_s9 }
  0x2e   : > { %s941_s20 = scalar_lea.vmem [#allocation5], %s595_s14 }
  0x2f   : > { %788 = dma.done.wait (%p896_p12), %s204_s19, 128  }
  0x30   : > { %790 = vsyncadd (%p896_p12), %s204_s19, 4294967168  ;;  %v264_v0 = vld [vmem:[#allocation2 + $0xf0] sm:$0xff]  ;;  %v265_v2 = vld [vmem:[#allocation2 + $0xf8] sm:$0xff]  ;;  %vm395_vm0 = vcmask 1043456   ;;  %vm391_vm1 = vcmask 31744   ;;  %s609_s25 = sshll.u32 %s864_s22, 3 }
  0x31   : > { %v296_v1 = vld [vmem:[#allocation2 + $0x1f0] sm:$0xff]  ;;  %304 = vmatpush.msra.mxu0 %v264_v0  ;;  %v297_v3 = vld [vmem:[#allocation2 + $0x1f8] sm:$0xff]  ;;  %v262_v4 = vld [vmem:[#allocation2 + $0xe0] sm:$0xff]  ;;  %344 = vmatpush.msra.mxu2 %v265_v2  ;;  %s499_s28 = scalar_lea.hbm %s1006_s4, %s609_s25  ;;  %s232_s22 = scalar_lea.vmem [#allocation7], %s595_s14 }
  0x32   : > { %324 = vmatpush.msra.mxu1 %v296_v1  ;;  %v294_v5 = vld [vmem:[#allocation2 + $0x1e0] sm:$0xff]  ;;  %364 = vmatpush.msra.mxu3 %v297_v3  ;;  %v263_v6 = vld [vmem:[#allocation2 + $0xe8] sm:$0xff]  ;;  %v260_v8 = vld [vmem:[#allocation2 + $0xd0] sm:$0xff]  ;;  %s501_s30 = sshll.u32 %s232_s22, 4  ;;  %s503_s5 = sshll.u32 %s499_s28, 4  ;;  %s502_s30 = int_to_ptr.vmem [resolvable:$true] %s501_s30  ;;  %s504_s5 = int_to_ptr.hbm [resolvable:$true] %s503_s5 }
  0x33   : > { %v295_v7 = vld [vmem:[#allocation2 + $0x1e8] sm:$0xff]  ;;  %305 = vmatpush.msra.mxu0 %v262_v4  ;;  %v292_v9 = vld [vmem:[#allocation2 + $0x1d0] sm:$0xff]  ;;  %v261_v10 = vld [vmem:[#allocation2 + $0xd8] sm:$0xff]  ;;  %345 = vmatpush.msra.mxu2 %v263_v6  ;;  %v814_v4 = vmov 0   ;;  %s488_s11 = scalar_lea.sflag [#allocation4], %s935_s9  ;;  %s753_s12 = sshra.s32 %s504_s5, 4  ;;  %s754_s12 = int_to_ptr.hbm [resolvable:$true] %s753_s12 }
  0x34   : > { %325 = vmatpush.msra.mxu1 %v294_v5  ;;  %v293_v11 = vld [vmem:[#allocation2 + $0x1d8] sm:$0xff]  ;;  %365 = vmatpush.msra.mxu3 %v295_v7  ;;  %v258_v12 = vld [vmem:[#allocation2 + $0xc0] sm:$0xff]  ;;  %v259_v14 = vld [vmem:[#allocation2 + $0xc8] sm:$0xff]  ;;  %s755_s13 = scalar_lea.hbm %s754_s12, 8  ;;  %p760_p12 = scmp.lt.s32.totalorder %s754_s12, %s1006_s4 }
  0x35   : > { %v290_v13 = vld [vmem:[#allocation2 + $0x1c0] sm:$0xff]  ;;  %306 = vmatpush.msra.mxu0 %v260_v8  ;;  %v291_v15 = vld [vmem:[#allocation2 + $0x1c8] sm:$0xff]  ;;  %346 = vmatpush.msra.mxu2 %v261_v10  ;;  %v256_v16 = vld [vmem:[#allocation2 + $0xb0] sm:$0xff]  ;;  %p756_p1 = scmp.ne.s32.totalorder %s754_s12, %s755_s13 }
  0x36   : > { %326 = vmatpush.msra.mxu1 %v292_v9  ;;  %366 = vmatpush.msra.mxu3 %v293_v11  ;;  %v288_v17 = vld [vmem:[#allocation2 + $0x1b0] sm:$0xff]  ;;  %v257_v18 = vld [vmem:[#allocation2 + $0xb8] sm:$0xff]  ;;  %v254_v20 = vld [vmem:[#allocation2 + $0xa0] sm:$0xff] }
  0x37   : > { %307 = vmatpush.msra.mxu0 %v258_v12  ;;  %v289_v19 = vld [vmem:[#allocation2 + $0x1b8] sm:$0xff]  ;;  %347 = vmatpush.msra.mxu2 %v259_v14  ;;  %v286_v21 = vld [vmem:[#allocation2 + $0x1a0] sm:$0xff]  ;;  %v255_v22 = vld [vmem:[#allocation2 + $0xa8] sm:$0xff]  ;;  %p757_p3 = pnand %p756_p1, %p900_p13 }
  0x38   : > { %327 = vmatpush.msra.mxu1 %v290_v13  ;;  %367 = vmatpush.msra.mxu3 %v291_v15  ;;  %v287_v23 = vld [vmem:[#allocation2 + $0x1a8] sm:$0xff]  ;;  %v252_v24 = vld [vmem:[#allocation2 + $0x90] sm:$0xff]  ;;  %v253_v26 = vld [vmem:[#allocation2 + $0x98] sm:$0xff] }
  0x39   : > { %308 = vmatpush.msra.mxu0 %v256_v16  ;;  %348 = vmatpush.msra.mxu2 %v257_v18  ;;  %v284_v25 = vld [vmem:[#allocation2 + $0x190] sm:$0xff]  ;;  %v285_v27 = vld [vmem:[#allocation2 + $0x198] sm:$0xff]  ;;  %v250_v28 = vld [vmem:[#allocation2 + $0x80] sm:$0xff]  ;;  %p758_p5 = pneg %p757_p3 }
  0x3a   : > { %328 = vmatpush.msra.mxu1 %v288_v17  ;;  %368 = vmatpush.msra.mxu3 %v289_v19  ;;  %v282_v29 = vld [vmem:[#allocation2 + $0x180] sm:$0xff]  ;;  %v251_v30 = vld [vmem:[#allocation2 + $0x88] sm:$0xff]  ;;  %v248_v32 = vld [vmem:[#allocation2 + $0x70] sm:$0xff] }
  0x3b   : > { %309 = vmatpush.msra.mxu0 %v254_v20  ;;  %349 = vmatpush.msra.mxu2 %v255_v22  ;;  %v283_v31 = vld [vmem:[#allocation2 + $0x188] sm:$0xff]  ;;  %v280_v33 = vld [vmem:[#allocation2 + $0x170] sm:$0xff]  ;;  %v249_v34 = vld [vmem:[#allocation2 + $0x78] sm:$0xff] }
  0x3c   : > { %329 = vmatpush.msra.mxu1 %v286_v21  ;;  %369 = vmatpush.msra.mxu3 %v287_v23  ;;  %v281_v35 = vld [vmem:[#allocation2 + $0x178] sm:$0xff]  ;;  %v246_v36 = vld [vmem:[#allocation2 + $0x60] sm:$0xff]  ;;  %v247_v38 = vld [vmem:[#allocation2 + $0x68] sm:$0xff] }
  0x3d   : > { %310 = vmatpush.msra.mxu0 %v252_v24  ;;  %350 = vmatpush.msra.mxu2 %v253_v26  ;;  %v278_v37 = vld [vmem:[#allocation2 + $0x160] sm:$0xff]  ;;  %v279_v39 = vld [vmem:[#allocation2 + $0x168] sm:$0xff]  ;;  %v244_v40 = vld [vmem:[#allocation2 + $0x50] sm:$0xff] }
  0x3e   : > { %330 = vmatpush.msra.mxu1 %v284_v25  ;;  %370 = vmatpush.msra.mxu3 %v285_v27  ;;  %v276_v41 = vld [vmem:[#allocation2 + $0x150] sm:$0xff]  ;;  %v245_v42 = vld [vmem:[#allocation2 + $0x58] sm:$0xff]  ;;  %v242_v44 = vld [vmem:[#allocation2 + $0x40] sm:$0xff] }
  0x3f   : > { %311 = vmatpush.msra.mxu0 %v250_v28  ;;  %351 = vmatpush.msra.mxu2 %v251_v30  ;;  %v277_v43 = vld [vmem:[#allocation2 + $0x158] sm:$0xff]  ;;  %v274_v45 = vld [vmem:[#allocation2 + $0x140] sm:$0xff]  ;;  %v243_v46 = vld [vmem:[#allocation2 + $0x48] sm:$0xff] }
  0x40   : > { %331 = vmatpush.msra.mxu1 %v282_v29  ;;  %371 = vmatpush.msra.mxu3 %v283_v31  ;;  %v275_v47 = vld [vmem:[#allocation2 + $0x148] sm:$0xff]  ;;  %v240_v49 = vld [vmem:[#allocation2 + $0x30] sm:$0xff]  ;;  %v241_v51 = vld [vmem:[#allocation2 + $0x38] sm:$0xff] }
  0x41   : > { %312 = vmatpush.msra.mxu0 %v248_v32  ;;  %352 = vmatpush.msra.mxu2 %v249_v34  ;;  %v948_v48 = vld [vmem:[%s941_s20] sm:$0xff]  ;;  %v272_v50 = vld [vmem:[#allocation2 + $0x130] sm:$0xff]  ;;  %v273_v52 = vld [vmem:[#allocation2 + $0x138] sm:$0xff]  ;;  %s759_s20 = scalar_lea.hbm %s1006_s4, 16 }
  0x42   : > { %332 = vmatpush.msra.mxu1 %v280_v33  ;;  %372 = vmatpush.msra.mxu3 %v281_v35  ;;  %299 = vst [vmem:[#allocation1] ss:$2 sm:$0xff] %v948_v48  ;;  %v238_v53 = vld [vmem:[#allocation2 + $0x20] sm:$0xff]  ;;  %v239_v55 = vld [vmem:[#allocation2 + $0x28] sm:$0xff]  ;;  %v236_v57 = vld [vmem:[#allocation2 + $0x10] sm:$0xff]  ;;  %p761_p8 = scmp.lt.s32.totalorder %s759_s20, %s755_s13 }
  0x43   : > { %313 = vmatpush.msra.mxu0 %v246_v36  ;;  %353 = vmatpush.msra.mxu2 %v247_v38  ;;  %v270_v54 = vld [vmem:[#allocation2 + $0x120] sm:$0xff]  ;;  %v271_v56 = vld [vmem:[#allocation2 + $0x128] sm:$0xff]  ;;  %v268_v58 = vld [vmem:[#allocation2 + $0x110] sm:$0xff] }
  0x44   : > { %333 = vmatpush.msra.mxu1 %v278_v37  ;;  %373 = vmatpush.msra.mxu3 %v279_v39  ;;  %v237_v59 = vld [vmem:[#allocation2 + $0x18] sm:$0xff]  ;;  %v234_v61 = vld [vmem:[#allocation2] sm:$0xff]  ;;  %v235_v63 = vld [vmem:[#allocation2 + $0x8] sm:$0xff]  ;;  %p762_p7 = por %p761_p8, %p760_p12 }
  0x45   : > { %314 = vmatpush.msra.mxu0 %v244_v40  ;;  %354 = vmatpush.msra.mxu2 %v245_v42  ;;  %v269_v60 = vld [vmem:[#allocation2 + $0x118] sm:$0xff]  ;;  %v266_v62 = vld [vmem:[#allocation2 + $0x100] sm:$0xff]  ;;  %v267_v0 = vld [vmem:[#allocation2 + $0x108] sm:$0xff] }
  0x46   : > { %334 = vmatpush.msra.mxu1 %v276_v41  ;;  %374 = vmatpush.msra.mxu3 %v277_v43  ;;  %v385_v3 = vld [vmem:[%s1004_s2] sm:$0xf]  ;;  %p763_p9 = pnand %p762_p7, %p758_p5 }
  0x47   : > { %315 = vmatpush.msra.mxu0 %v242_v44  ;;  %355 = vmatpush.msra.mxu2 %v243_v46  ;;  %v384_v8 = vld [vmem:[%s1003_s1] sm:$0xf] }
  0x48   : > { %335 = vmatpush.msra.mxu1 %v274_v45  ;;  %375 = vmatpush.msra.mxu3 %v275_v47 }
  0x49   : > { %316 = vmatpush.msra.mxu0 %v240_v49  ;;  %356 = vmatpush.msra.mxu2 %v241_v51  ;;  %v300_v1 = vld.sshfl [vmem:[#allocation1] sm:$0xff pattern:$0x75316420]  ;;  %v301_v2 = vld.sshfl [vmem:[#allocation1 + $0x8] sm:$0xff pattern:$0x75316420] }
  0x4a   : > { %336 = vmatpush.msra.mxu1 %v272_v50  ;;  %376 = vmatpush.msra.mxu3 %v273_v52 }
  0x4b   : > { %317 = vmatpush.msra.mxu0 %v238_v53  ;;  %357 = vmatpush.msra.mxu2 %v239_v55 }
  0x4c   : > { %337 = vmatpush.msra.mxu1 %v270_v54  ;;  %377 = vmatpush.msra.mxu3 %v271_v56 }
  0x4d   : > { %318 = vmatpush.msra.mxu0 %v236_v57  ;;  %358 = vmatpush.msra.mxu2 %v237_v59 }
  0x4e   : > { %338 = vmatpush.msra.mxu1 %v268_v58  ;;  %378 = vmatpush.msra.mxu3 %v269_v60 }
  0x4f   : > { %319 = vmatpush.msra.mxu0 %v234_v61  ;;  %359 = vmatpush.msra.mxu2 %v235_v63 }
  0x50   : > { %339 = vmatpush.msra.mxu1 %v266_v62  ;;  %379 = vmatpush.msra.mxu3 %v267_v0 }
  0x51   : > { %320 = vmatmul.f32.vlgmr.msra.gmra.mxu0 %v300_v1  ;;  %340 = vmatmul.f32.vlgmr.msra.gmra.mxu1 %v301_v2 }
  0x52   : > { %360 = vmatmul.f32.vlgmr.msra.gmra.mxu2 %v300_v1  ;;  %380 = vmatmul.f32.vlgmr.msra.gmra.mxu3 %v301_v2 }
  0x53   : > { %670 = vset.pattern.permute.xlu0 %v814_v4 }
  0x54   : > { %388 = vperm.xlu0 %670, %v385_v3  }
  0xc6   : > { %v389_v12 = vpop.permute.xlu0 %388 }
  0xce   : > { %v321_v5 = vpop.f32.mrf.mxu0  ;;  %v341_v6 = vpop.f32.mrf.mxu1 }
  0xcf   : > { %v342_v7 = vadd.f32 %v341_v6, %v321_v5 }
  0xd1   : > { %597 = vmatpush.msk.msrb.mxu0 %vm395_vm0, %v342_v7 }
  0xd2   : > { %598 = vmatmul.msk.f32.vlgmr.msrb.gmra.mxu0 %vm391_vm1, %v384_v8 }
  0xd5   : > { %v361_v9 = vpop.f32.mrf.mxu2  ;;  %v381_v10 = vpop.f32.mrf.mxu3 }
  0xd6   : > { %v382_v11 = vadd.f32 %v381_v10, %v361_v9 }
  0xd8   : > { %599 = vmatpush.msk.msrb.mxu1 %vm395_vm0, %v382_v11 }
  0xd9   : > { %600 = vmatmul.msk.f32.vlgmr.msrb.gmra.mxu1 %vm391_vm1, %v384_v8 }
 0x14f   : > { %v419_v13 = vpop.f32.mrf.mxu0 }
 0x150   : > { %v420_v14 = vadd.f32 %v419_v13, %v389_v12 }
 0x152   : > { %v601_v15 = vmul.f32 -1.442695, %v420_v14 }
 0x154   : > { %671 = vpow2.f32 %v601_v15 }
 0x156   : > { %v439_v16 = vpop.f32.mrf.mxu1 }
 0x157   : > { %v440_v17 = vadd.f32 %v439_v16, %v389_v12 }
 0x159   : > { %v602_v18 = vmul.f32 -1.442695, %v440_v17 }
 0x15a   : > { %v672_v19 = vpop.eup %671 }
 0x15b   : > { %v448_v20 = vadd.f32 1.0, %v672_v19  ;;  %673 = vpow2.f32 %v602_v18 }
 0x15d   : > { %675 = vrcp.f32 %v448_v20  ;;  %vm455_vm2 = vweird.f32 %v448_v20  ;;  %v461_v34 = vand.u32 2147483648, %v448_v20  ;;  %v459_v36 = vand.u32 2147483647, %v448_v20 }
 0x15f   : > { %v462_v41 = vor.u32 1.1754944e-38, %v461_v34  ;;  %vm460_vm9 = vcmp.eq.f32.partialorder %v459_v36, 8.507059e+37 }
 0x161   : > { %v674_v21 = vpop.eup %673 }
 0x162   : > { %v449_v22 = vadd.f32 1.0, %v674_v21 }
 0x163   : > { %v676_v23 = vpop.eup %675 }
 0x164   : > { %v451_v24 = vmul.f32 %v676_v23, %v448_v20  ;;  %677 = vrcp.f32 %v449_v22  ;;  %vm456_vm3 = vweird.f32 %v676_v23  ;;  %v476_v30 = vand.u32 2147483648, %v449_v22 }
 0x165   : > { %v474_v32 = vand.u32 2147483647, %v449_v22  ;;  %vm960_vm5 = vmor %vm455_vm2, %vm456_vm3  ;;  %vm470_vm6 = vweird.f32 %v449_v22 }
 0x166   : > { %v452_v25 = vsub.f32 1.0, %v451_v24  ;;  %v477_v38 = vor.u32 1.1754944e-38, %v476_v30 }
 0x167   : > { %vm475_vm8 = vcmp.eq.f32.partialorder %v474_v32, 8.507059e+37 }
 0x168   : > { %v453_v27 = vmul.f32 %v676_v23, %v452_v25 }
 0x16a   : > { %v678_v26 = vpop.eup %677  ;;  %v454_v33 = vadd.f32 %v676_v23, %v453_v27 }
 0x16b   : > { %v466_v28 = vmul.f32 %v678_v26, %v449_v22  ;;  %vm471_vm4 = vweird.f32 %v678_v26 }
 0x16c   : > { %vm472_vm7 = vmor %vm470_vm6, %vm471_vm4  ;;  %v458_v39 = vsel %vm960_vm5, %v676_v23, %v454_v33 }
 0x16d   : > { %v467_v29 = vsub.f32 1.0, %v466_v28  ;;  %v463_v44 = vsel %vm460_vm9, %v462_v41, %v458_v39 }
 0x16f   : > { %v468_v31 = vmul.f32 %v678_v26, %v467_v29 }
 0x171   : > { %v469_v37 = vadd.f32 %v678_v26, %v468_v31 }
 0x173   : > { %v473_v40 = vsel %vm472_vm7, %v678_v26, %v469_v37 }
 0x174   : > { %v478_v42 = vsel %vm475_vm8, %v477_v38, %v473_v40 }
 0x175   : > { %v482_v43 = vrot.slane %v478_v42, 4 }
 0x177   : > { %v483_v45 = vsel %vm395_vm0, %v463_v44, %v482_v43 }
 0x178   : > { %v485_v46 = vadd.f32 %v483_v45, %v948_v48 }
 0x17a   : > { %486 = vst [vmem:[%s232_s22] sm:$0xff] %v485_v46 }
 0x17b   : > { %766 = shalt.err (!%p763_p9)
}
 0x17c   : > { %616 = dma.vmem_to_hbm [thread:$0]  (%p900_p13), %s502_s30, 128, %s504_s5, %s488_s11  }
 0x17d PF: > { %s515_s9 = sand.u32 1, %s797_s15   ;;  %p1014_p10 = scmp.ge.s32.totalorder %s809_s18, 2 }
 0x17e   : > { %s516_s21 = scalar_lea.sflag [#allocation4], %s515_s9 }
 0x17f   : > { %p627_p11 = pnand %p1014_p10, %p905_p4 }
 0x181   : > { %p628_p0 = pneg %p627_p11 }
 0x183   : > { %792 = dma.done.wait (%p628_p0), %s516_s21, 128  }
 0x184   : > { %794 = vsyncadd (%p628_p0), %s516_s21, 4294967168  ;;  %p18_p2 = scmp.ge.s32.totalorder %s880_s29, 4   ;;  %s1015_s15 = smov %s801_s16 }
 0x185   : > { %s1016_s16 = smov %s805_s17  ;;  %s1017_s17 = smov %s892_s6 }
 0x186   : > { %s1018_s18 = smov %s880_s29  ;;  %20 = sbr.rel (!%p18_p2) target bundleno = 6 (0x6), region = 86 }
 0x18b   :  { %522 = vsyncpa [#allocation3], 1 }
 0x18c   :  { %524 = vsyncpa [#allocation3 + $0x1], 1 }
 0x18d   :  { %525 = vsyncpa [#allocation6], 1 }
 0x18e   :  { %527 = vsyncpa [#allocation6 + $0x1], 1 }
 0x18f   :  { %528 = vsyncpa [#allocation4], 1 }
 0x190   :  { %530 = vsyncpa [#allocation4 + $0x1], 1 }

</bundles_post_ra>
